<compile_context>
chip_gen: v7x
topology: tpu7x:2x2x1
jax: 0.10.0
libtpu: 0.0.40
codegen_flags: <defaults>
</compile_context>

<pallas_src>
import math

import jax
import jax.numpy as jnp
from jax.experimental import pallas as pl
from jax.experimental.pallas import tpu as pltpu


def _round_up(x, m):
    return (x + m - 1) // m * m


# ---------------------------------------------------------------------------
# Kernels: grouped matmul with K-axis accumulation.
#   grid = (g, i, j, k); the group axis is squeezed out of every block.
#   x_ref: (tm, tk)   w_ref: (tk, tn)   [b_ref: (1, tn)]   o_ref: (tm, tn)
# ---------------------------------------------------------------------------
def _glt_kernel_bias(x_ref, w_ref, b_ref, o_ref, acc_ref):
    k = pl.program_id(3)

    @pl.when(k == 0)
    def _():
        acc_ref[...] = jnp.zeros_like(acc_ref)

    acc_ref[...] += jnp.dot(
        x_ref[...], w_ref[...], preferred_element_type=jnp.float32
    )

    @pl.when(k == pl.num_programs(3) - 1)
    def _():
        o_ref[...] = (acc_ref[...] + b_ref[...].astype(jnp.float32)).astype(
            o_ref.dtype
        )


def _glt_kernel_nobias(x_ref, w_ref, o_ref, acc_ref):
    k = pl.program_id(3)

    @pl.when(k == 0)
    def _():
        acc_ref[...] = jnp.zeros_like(acc_ref)

    acc_ref[...] += jnp.dot(
        x_ref[...], w_ref[...], preferred_element_type=jnp.float32
    )

    @pl.when(k == pl.num_programs(3) - 1)
    def _():
        o_ref[...] = acc_ref[...].astype(o_ref.dtype)


# ---------------------------------------------------------------------------
# Wrapper
# ---------------------------------------------------------------------------
def group_linear(x, weights, bias=None, *, use_shuffle=False,
                 tm=256, tn=512, tk=1024):
    """GroupLinear forward.

    x:       (T, B, in_features) or (M, in_features)
    weights: (G, in_groups, out_groups)
    bias:    (G, 1, out_groups) or None
    Returns  (T, B, out_features) or (M, out_features).

    Default tiles (tm=256, tn=512, tk=1024, f32) need ~7.5 MiB of VMEM with
    double-buffering, which fits every generation's scoped-VMEM default
    (v5e 16 MiB / v6e 32 MiB / v7x 32 MiB of 64 MiB physical).
    """
    G, in_groups, out_groups = weights.shape
    out_features = G * out_groups

    orig_ndim = x.ndim
    if x.ndim == 3:
        T, B, N = x.shape
        x2d = x.reshape(T * B, N)
    elif x.ndim == 2:
        x2d = x
    else:
        raise NotImplementedError("GroupLinear expects 2-D or 3-D input")
    M, N = x2d.shape
    assert N == G * in_groups, "in_features must equal n_groups * in_groups"

    # (G, M, in_groups): each group's rows contiguous for the batched matmul.
    xg = x2d.reshape(M, G, in_groups).transpose(1, 0, 2)

    # ---- tile selection (multiples of (8, 128); no divisibility asserts) ----
    tm = min(tm, _round_up(M, 8))                 # clamp to problem size
    Mp = _round_up(M, tm)

    Kp = _round_up(in_groups, 128)
    tk = min(tk, Kp)
    while Kp % tk:
        tk -= 128

    Np = _round_up(out_groups, 128)
    tn = min(tn, Np)
    while Np % tn:
        tn -= 128

    # ---- zero-pad to the tiled shapes (zeros in K contribute nothing) ------
    xg_p = jnp.pad(xg, ((0, 0), (0, Mp - M), (0, Kp - in_groups)))
    w_p = jnp.pad(weights, ((0, 0), (0, Kp - in_groups), (0, Np - out_groups)))

    use_bias = bias is not None
    if use_bias:
        b_p = jnp.pad(bias, ((0, 0), (0, 0), (0, Np - out_groups)))

    # ---- VMEM budget (double-buffered in/out + f32 accumulator) ------------
    itemsize = jnp.dtype(x.dtype).itemsize
    vmem_need = (2 * (tm * tk + tk * tn + tm * tn) * itemsize  # dbl-buffered
                 + tm * tn * 4)                                # accumulator
    if use_bias:
        vmem_need += 2 * tn * itemsize
    # >= default scoped limit, with headroom; capped safely below v7x physical.
    vmem_limit = min(max(2 * vmem_need, 32 * 1024 * 1024), 48 * 1024 * 1024)

    grid = (G, Mp // tm, Np // tn, Kp // tk)

    in_specs = [
        # x tile: depends on (group, row-tile, k-tile)
        pl.BlockSpec((None, tm, tk), lambda g, i, j, k: (g, i, k)),
        # weight tile in natural (K, N) layout -> no in-kernel transpose
        pl.BlockSpec((None, tk, tn), lambda g, i, j, k: (g, k, j)),
    ]
    args = [xg_p, w_p]
    if use_bias:
        in_specs.append(pl.BlockSpec((None, 1, tn), lambda g, i, j, k: (g, 0, j)))
        args.append(b_p)
        kernel = _glt_kernel_bias
    else:
        kernel = _glt_kernel_nobias

    yg = pl.pallas_call(
        kernel,
        out_shape=jax.ShapeDtypeStruct((G, Mp, Np), x.dtype),
        grid_spec=pltpu.PrefetchScalarGridSpec(
            num_scalar_prefetch=0,
            grid=grid,
            in_specs=in_specs,
            out_specs=pl.BlockSpec((None, tm, tn), lambda g, i, j, k: (g, i, j)),
            scratch_shapes=[pltpu.VMEM((tm, tn), jnp.float32)],
        ),
        compiler_params=pltpu.CompilerParams(
            dimension_semantics=("parallel", "parallel", "parallel", "arbitrary"),
            vmem_limit_bytes=vmem_limit,
        ),
    )(*args)

    # strip padding: (G, M, out_groups)
    yg = yg[:, :M, :out_groups]

    if use_shuffle:
        # torch: (G, M, og) -> permute(1, 2, 0) -> view(M, G*og)
        y2d = yg.transpose(1, 2, 0).reshape(M, out_features)
    else:
        # torch: (G, M, og) -> transpose(0, 1) -> (M, G, og) -> view(M, G*og)
        y2d = yg.transpose(1, 0, 2).reshape(M, out_features)

    if orig_ndim == 3:
        return y2d.reshape(T, B, out_features)
    return y2d


# ---------------------------------------------------------------------------
# Parameter init matching GroupLinear.reset_parameters()
#   xavier_uniform_ on weights (PyTorch fan rules for a 3-D tensor),
#   bias initialized to zeros.
# ---------------------------------------------------------------------------
def init_group_linear_params(key, in_features, out_features, n_groups=4,
                             use_bias=False, dtype=jnp.float32):
    assert in_features % n_groups == 0 and out_features % n_groups == 0
    in_groups = in_features // n_groups
    out_groups = out_features // n_groups
    # torch._calculate_fan_in_and_fan_out for (G, ig, og):
    #   fan_in = ig * og, fan_out = G * og
    fan_in = in_groups * out_groups
    fan_out = n_groups * out_groups
    a = math.sqrt(6.0 / (fan_in + fan_out))
    w = jax.random.uniform(key, (n_groups, in_groups, out_groups), dtype=dtype,
                           minval=-a, maxval=a)
    b = jnp.zeros((n_groups, 1, out_groups), dtype=dtype) if use_bias else None
    return w, b


# ---------------------------------------------------------------------------
# Plain-JAX reference (mirrors process_input_bmm)
# ---------------------------------------------------------------------------
def group_linear_ref(x, weights, bias=None, use_shuffle=False):
    G, ig, og = weights.shape
    T, B, N = x.shape
    M = T * B
    xg = x.reshape(M, N).reshape(M, G, ig).transpose(1, 0, 2)        # (G, M, ig)
    y = jnp.einsum("gmi,gio->gmo", xg, weights)
    if bias is not None:
        y = y + bias
    if use_shuffle:
        y2d = y.transpose(1, 2, 0).reshape(M, G * og)
    else:
        y2d = y.transpose(1, 0, 2).reshape(M, G * og)
    return y2d.reshape(T, B, G * og)


if __name__ == "__main__":
    key = jax.random.PRNGKey(0)
    k_w, k_b, k_x = jax.random.split(key, 3)

    # small shapes consistent with the module: x is [T x B x N]
    T, B = 8, 2
    in_features, out_features, n_groups = 128, 256, 4
    out_groups = out_features // n_groups

    weights, _ = init_group_linear_params(k_w, in_features, out_features,
                                          n_groups=n_groups, use_bias=False)
    x = jax.random.normal(k_x, (T, B, in_features), dtype=jnp.float32)

    # --- default config path: no bias, no shuffle ---
    y = group_linear(x, weights)
    y = jax.block_until_ready(y)
    y_ref = group_linear_ref(x, weights)
    assert y.shape == (T, B, out_features)
    assert jnp.allclose(y, y_ref, atol=1e-4, rtol=1e-4)

    # --- use_bias=True path (bias folded into the last-K finalize step) ---
    bias = 0.1 * jax.random.normal(k_b, (n_groups, 1, out_groups),
                                   dtype=jnp.float32)
    yb = group_linear(x, weights, bias)
    yb = jax.block_until_ready(yb)
    yb_ref = group_linear_ref(x, weights, bias)
    assert jnp.allclose(yb, yb_ref, atol=1e-4, rtol=1e-4)

    # --- use_shuffle=True path (post-kernel permutation only) ---
    ys = group_linear(x, weights, bias, use_shuffle=True)
    ys = jax.block_until_ready(ys)
    ys_ref = group_linear_ref(x, weights, bias, use_shuffle=True)
    assert jnp.allclose(ys, ys_ref, atol=1e-4, rtol=1e-4)

    print("KERNEL_OK")
</pallas_src>

<mosaic_0001>
module attributes {stable_mosaic.version = 11 : i64} {
  func.func @_glt_kernel_nobias(%arg0: i32, %arg1: i32, %arg2: i32, %arg3: i32, %arg4: memref<1x16x128xf32, #tpu.memory_space<vmem>>, %arg5: memref<1x128x128xf32, #tpu.memory_space<vmem>>, %arg6: memref<1x16x128xf32, #tpu.memory_space<vmem>>, %arg7: memref<16x128xf32, #tpu.memory_space<vmem>>) attributes {dimension_semantics = [#tpu.dimension_semantics<parallel>, #tpu.dimension_semantics<parallel>, #tpu.dimension_semantics<parallel>, #tpu.dimension_semantics<arbitrary>], iteration_bounds = array<i64: 4, 1, 1, 1>, scalar_prefetch = 0 : i64, scratch_operands = 1 : i64, tpu.core_type = #tpu.core_type<tc>, window_params = [{transform_indices = @transform_0, window_bounds = array<i64: 1, 16, 128>}, {transform_indices = @transform_1, window_bounds = array<i64: 1, 128, 128>}, {transform_indices = @transform_2, window_bounds = array<i64: 1, 16, 128>}]} {
    %c0_i32 = arith.constant 0 : i32
    %0 = arith.cmpi eq, %arg3, %c0_i32 : i32
    %1 = arith.extui %0 : i1 to i32
    %c0_i32_0 = arith.constant 0 : i32
    %2 = arith.cmpi ne, %1, %c0_i32_0 : i32
    scf.if %2 {
      %cst_12 = arith.constant 0.000000e+00 : f32
      %14 = vector.broadcast %cst_12 : f32 to vector<16x128xf32>
      %c0_13 = arith.constant 0 : index
      %c0_14 = arith.constant 0 : index
      %15 = vector.load %arg7[%c0_13, %c0_14] : memref<16x128xf32, #tpu.memory_space<vmem>>, vector<16x128xf32>
      tpu.vector_store %arg7[%c0_13, %c0_14], %14 {strides = array<i32>} : memref<16x128xf32, #tpu.memory_space<vmem>>, vector<16x128xf32>,
    } else {
    }
    %c0 = arith.constant 0 : index
    %c0_1 = arith.constant 0 : index
    %3 = vector.load %arg7[%c0, %c0_1] : memref<16x128xf32, #tpu.memory_space<vmem>>, vector<16x128xf32>
    %c0_2 = arith.constant 0 : index
    %c0_3 = arith.constant 0 : index
    %c0_4 = arith.constant 0 : index
    %4 = vector.load %arg4[%c0_2, %c0_3, %c0_4] : memref<1x16x128xf32, #tpu.memory_space<vmem>>, vector<1x16x128xf32>
    %5 = vector.shape_cast %4 : vector<1x16x128xf32> to vector<16x128xf32>
    %c0_5 = arith.constant 0 : index
    %c0_6 = arith.constant 0 : index
    %c0_7 = arith.constant 0 : index
    %6 = vector.load %arg5[%c0_5, %c0_6, %c0_7] : memref<1x128x128xf32, #tpu.memory_space<vmem>>, vector<1x128x128xf32>
    %7 = vector.shape_cast %6 : vector<1x128x128xf32> to vector<128x128xf32>
    %cst = arith.constant dense<0.000000e+00> : vector<16x128xf32>
    %8 = tpu.matmul %5, %7, %cst {dimension_numbers = #tpu.dot_dimension_numbers<[1], [0], [0], [1], [0, 0, 1, 1], [], []>} : vector<16x128xf32>, vector<128x128xf32>, vector<16x128xf32> -> vector<16x128xf32>
    %9 = arith.addf %3, %8 : vector<16x128xf32>
    %c0_8 = arith.constant 0 : index
    %c0_9 = arith.constant 0 : index
    %10 = vector.load %arg7[%c0_8, %c0_9] : memref<16x128xf32, #tpu.memory_space<vmem>>, vector<16x128xf32>
    tpu.vector_store %arg7[%c0_8, %c0_9], %9 {strides = array<i32>} : memref<16x128xf32, #tpu.memory_space<vmem>>, vector<16x128xf32>,
    %c0_i32_10 = arith.constant 0 : i32
    %11 = arith.cmpi eq, %arg3, %c0_i32_10 : i32
    %12 = arith.extui %11 : i1 to i32
    %c0_i32_11 = arith.constant 0 : i32
    %13 = arith.cmpi ne, %12, %c0_i32_11 : i32
    scf.if %13 {
      %c0_12 = arith.constant 0 : index
      %c0_13 = arith.constant 0 : index
      %14 = vector.load %arg7[%c0_12, %c0_13] : memref<16x128xf32, #tpu.memory_space<vmem>>, vector<16x128xf32>
      %c0_14 = arith.constant 0 : index
      %c0_15 = arith.constant 0 : index
      %c0_16 = arith.constant 0 : index
      %15 = vector.load %arg6[%c0_14, %c0_15, %c0_16] : memref<1x16x128xf32, #tpu.memory_space<vmem>>, vector<1x16x128xf32>
      %16 = vector.shape_cast %15 : vector<1x16x128xf32> to vector<16x128xf32>
      %17 = vector.shape_cast %14 : vector<16x128xf32> to vector<1x16x128xf32>
      tpu.vector_store %arg6[%c0_14, %c0_15, %c0_16], %17 {strides = array<i32>} : memref<1x16x128xf32, #tpu.memory_space<vmem>>, vector<1x16x128xf32>,
    } else {
    }
    return
  }
  func.func @transform_0(%arg0: i32, %arg1: i32, %arg2: i32, %arg3: i32) -> (i32, i32, i32) {
    %c0_i32 = arith.constant 0 : i32
    return %arg0, %arg1, %arg3 : i32, i32, i32
  }
  func.func @transform_1(%arg0: i32, %arg1: i32, %arg2: i32, %arg3: i32) -> (i32, i32, i32) {
    %c0_i32 = arith.constant 0 : i32
    return %arg0, %arg3, %arg2 : i32, i32, i32
  }
  func.func @transform_2(%arg0: i32, %arg1: i32, %arg2: i32, %arg3: i32) -> (i32, i32, i32) {
    %c0_i32 = arith.constant 0 : i32
    return %arg0, %arg1, %arg2 : i32, i32, i32
  }
}

</mosaic_0001>

<bundles_post_ra>
// kernel: tpu_custom_call.1
= control target key start
LH: loop header
LB: loop body
LE: loop exit
PB: predicated region body
PF: predicated region fallthrough
CT: control target
= control target key end

     0   :  { %7 = vsyncpa [#allocation4], 0  ;;  %s1103_s0 = inlined_call_operand.hbm [shape: f32[4,16,128], index: 0, kind: input, shape index: {}]   ;;  %s1104_s1 = inlined_call_operand.hbm [shape: f32[4,128,128], index: 1, kind: input, shape index: {}]   ;;  %s1105_s2 = inlined_call_operand.hbm [shape: f32[4,16,128], index: 2, kind: output, shape index: {}]  }
   0x1   :  { %9 = vsyncpa [#allocation4 + $0x1], 0 }
   0x2   :  { %10 = vsyncpa [#allocation7], 0 }
   0x3   :  { %12 = vsyncpa [#allocation7 + $0x1], 0 }
   0x4   :  { %13 = vsyncpa [#allocation5], 0 }
   0x5   :  { %15 = vsyncpa [#allocation5 + $0x1], 0  ;;  %s848_s9 = smov 0   ;;  %s850_s10 = smov 0  }
   0x6   :  { %s852_s11 = smov 0   ;;  %s854_s12 = smov 0  }
   0x7   :  { %s856_s13 = smov 0   ;;  %s858_s14 = smov 0  }
   0x8 LB: > { %s500_s15 = sadd.s32 4294967295, %s824_s14   ;;  %s501_s16 = sadd.s32 4294967294, %s824_s14   ;;  %s824_s14 = sphi %s858_s14, %s21_s14   ;;  %s820_s13 = sphi %s856_s13, %s1122_s13   ;;  %s816_s12 = sphi %s854_s12, %s1121_s12   ;;  %s812_s11 = sphi %s852_s11, %s1120_s11   ;;  %s808_s10 = sphi %s850_s10, %s1119_s10   ;;  %s804_s9 = sphi %s848_s9, %s1118_s9  }
   0x9   : > { %s47_s17 = sadd.s32 1, %s820_s13  ;;  %s58_s18 = sadd.s32 1, %s812_s11 }
   0xa   : > { %p49_p0 = scmp.ge.s32.totalorder %s47_s17, 4  ;;  %p65_p1 = scmp.ne.s32.totalorder %s812_s11, %s808_s10 }
   0xb   : > { %p66_p2 = scmp.eq.s32.totalorder %s824_s14, 0  ;;  %p71_p3 = scmp.ne.s32.totalorder %s808_s10, %s804_s9 }
   0xc   : > { %s1124_s17 = smov (%p49_p0, %s47_s17), 0  ;;  %p72_p5 = scmp.eq.s32.totalorder %s500_s15, 0 }
   0xd   : > { %p889_p4 = por %p66_p2, %p65_p1  ;;  %s51_s20 = ssub.s32 %s820_s13, %s1124_s17 }
   0xe   : > { %p129_p6 = scmp.eq.s32.totalorder %s500_s15, 3  ;;  %p56_p7 = scmp.eq.s32.totalorder %s51_s20, 0 }
   0xf   : > { %p895_p8 = por %p72_p5, %p71_p3  ;;  %p135_p10 = scmp.eq.s32.totalorder %s501_s16, 3 }
  0x10   : > { %p899_p9 = por %p129_p6, %p65_p1  ;;  %p624_p12 = scmp.lt.s32.totalorder %s824_s14, 4 }
  0x11   : > { %s1109_s21 = scalar_select %p895_p8, 1, 0 }
  0x12   : > { %s1110_s22 = scalar_select %p899_p9, 1, 0 }
  0x13   : > { %s904_s23 = scalar_select %p56_p7, %s812_s11, %s58_s18  }
  0x14   : > { %p906_p11 = por %p135_p10, %p71_p3  ;;  %s912_s25 = sand.u32 1, %s812_s11  }
  0x15   : > { %s504_s26 = sshll.u32 %s912_s25, 4  ;;  %s519_s27 = sshll.u32 %s820_s13, 8 }
  0x16   : > { %s1111_s24 = scalar_select %p906_p11, 1, 0 }
  0x17   : > { %s919_s30 = scalar_lea.hbm %s1103_s0, %s519_s27  ;;  %s159_s3 = scalar_lea.vmem [#allocation3], %s504_s26 }
  0x18   : > { %s169_s4 = sshll.u32 %s159_s3, 4  ;;  %p925_p13 = pnand %p624_p12, %p889_p4  ;;  %s921_s4 = int_to_ptr.vmem [resolvable:$true] %s169_s4 }
  0x19   : > { %s156_s6 = scalar_lea.sflag [#allocation4], %s912_s25  ;;  %s678_s7 = scalar_lea.hbm %s919_s30, 256 }
  0x1a   : > { %p679_p1 = scmp.ne.s32.totalorder %s919_s30, %s678_s7  ;;  %p680_p2 = pneg %p925_p13 }
  0x1b   : > { %s683_s16 = scalar_lea.hbm %s1103_s0, 1024  ;;  %p684_p4 = scmp.lt.u32.totalorder %s919_s30, %s1103_s0 }
  0x1c   : > { %p681_p3 = pnand %p680_p2, %p679_p1  ;;  %p685_p6 = scmp.lt.u32.totalorder %s683_s16, %s678_s7 }
  0x1d   : > { %p687_p10 = scmp.lt.u32.totalorder %s678_s7, %s919_s30 }
  0x1e   : > { %p682_p5 = pneg %p681_p3  ;;  %p686_p7 = por %p685_p6, %p684_p4 }
  0x20   : > { %p688_p12 = por %p687_p10, %p686_p7 }
  0x22   : > { %p689_p0 = pnand %p688_p12, %p682_p5 }
  0x24   : > { %692 = shalt.err (!%p689_p0)
}
  0x25   : > { %s693_s20 = scalar_lea.vmem %s921_s4, 256  ;;  %s826_s26 = smov [#allocation3]  }
  0x26   : > { %p694_p1 = scmp.ne.s32.totalorder %s921_s4, %s693_s20  ;;  %s698_s27 = sshll.u32 %s826_s26, 4  ;;  %s699_s27 = int_to_ptr.vmem [resolvable:$false] %s698_s27 }
  0x27   : > { %s700_s28 = scalar_lea.vmem %s699_s27, 512  ;;  %p701_p9 = scmp.lt.s32.totalorder %s921_s4, %s699_s27 }
  0x28   : > { %p696_p3 = pnand %p694_p1, %p680_p2  ;;  %p702_p4 = scmp.lt.s32.totalorder %s700_s28, %s693_s20 }
  0x2a   : > { %p697_p11 = pneg %p696_p3  ;;  %p703_p6 = por %p702_p4, %p701_p9 }
  0x2c   : > { %p704_p7 = pnand %p703_p6, %p697_p11 }
  0x2e   : > { %707 = shalt.err (!%p704_p7)
}
  0x2f   : > { %s827_s29 = smov 128   ;;  %s828_s3 = smov 8  }
  0x30   : > { %616 = dma.hbm_to_vmem [thread:$0]  (!%p925_p13), %s919_s30, 256, %s921_s4, %s156_s6, %s827_s29, %s827_s29, %s828_s3  }
  0x31   : > { %p201_p9 = scmp.lt.s32.totalorder %s824_s14, 5  ;;  %s507_s7 = sshll.u32 %s912_s25, 7 }
  0x32   : > { %s520_s8 = sshll.u32 %s820_s13, 11  ;;  %p1113_p11 = scmp.ge.s32.totalorder %s824_s14, 1 }
  0x33   : > { %s973_s19 = scalar_lea.hbm %s1104_s1, %s520_s8  ;;  %s183_s20 = scalar_lea.vmem [#allocation6], %s507_s7 }
  0x34   : > { %p966_p0 = pnand %p1113_p11, %p201_p9  ;;  %s193_s26 = sshll.u32 %s183_s20, 4  ;;  %s975_s26 = int_to_ptr.vmem [resolvable:$true] %s193_s26 }
  0x35   : > { %s180_s30 = scalar_lea.sflag [#allocation7], %s912_s25  ;;  %s708_s4 = scalar_lea.hbm %s973_s19, 2048 }
  0x36   : > { %p709_p5 = scmp.ne.s32.totalorder %s973_s19, %s708_s4  ;;  %s713_s28 = scalar_lea.hbm %s1104_s1, 8192 }
  0x37   : > { %p714_p1 = scmp.lt.u32.totalorder %s973_s19, %s1104_s1  ;;  %p715_p3 = scmp.lt.u32.totalorder %s713_s28, %s708_s4 }
  0x38   : > { %p711_p10 = pnand %p709_p5, %p680_p2  ;;  %p717_p6 = scmp.lt.u32.totalorder %s708_s4, %s973_s19 }
  0x39   : > { %p716_p4 = por %p715_p3, %p714_p1 }
  0x3a   : > { %p712_p12 = pneg %p711_p10 }
  0x3b   : > { %p718_p7 = por %p717_p6, %p716_p4 }
  0x3d   : > { %p719_p9 = pnand %p718_p7, %p712_p12 }
  0x3f   : > { %722 = shalt.err (!%p719_p9)
}
  0x40   : > { %s723_s7 = scalar_lea.vmem %s975_s26, 2048  ;;  %s829_s18 = smov [#allocation6]  }
  0x41   : > { %p724_p11 = scmp.ne.s32.totalorder %s975_s26, %s723_s7  ;;  %s728_s20 = sshll.u32 %s829_s18, 4  ;;  %s729_s20 = int_to_ptr.vmem [resolvable:$false] %s728_s20 }
  0x42   : > { %s730_s6 = scalar_lea.vmem %s729_s20, 4096  ;;  %p731_p8 = scmp.lt.s32.totalorder %s975_s26, %s729_s20 }
  0x43   : > { %p726_p5 = pnand %p724_p11, %p680_p2  ;;  %p732_p1 = scmp.lt.s32.totalorder %s730_s6, %s723_s7 }
  0x45   : > { %p727_p10 = pneg %p726_p5  ;;  %p733_p3 = por %p732_p1, %p731_p8 }
  0x47   : > { %p734_p4 = pnand %p733_p3, %p727_p10 }
  0x49   : > { %737 = shalt.err (!%p734_p4)
}
  0x4a   : > { %619 = dma.hbm_to_vmem [thread:$0]  (!%p925_p13), %s973_s19, 2048, %s975_s26, %s180_s30, %s827_s29, %s827_s29, %s828_s3  }
  0x4b   : > { %205 = sbr.rel (%p966_p0) target bundleno = 349 (0x15d), region = 28  ;;  %s1009_s4 = sand.u32 (!%p966_p0), 1, %s808_s10  }
  0x4c   : > { %s511_s27 = sshll.u32 (!%p966_p0), %s1009_s4, 4  ;;  %s208_s5 = scalar_lea.sflag (!%p966_p0), [#allocation4], %s1009_s4 }
  0x4d   : > { %s1015_s28 = scalar_lea.vmem (!%p966_p0), [#allocation3], %s511_s27  ;;  %p1115_p8 = scmp.ne.s32.totalorder (!%p966_p0), %s1109_s21, 0 }
  0x52   : > { %791 = dma.done.wait (%p1115_p8), %s208_s5, 256  }
  0x53   : > { %793 = vsyncadd (%p1115_p8), %s208_s5, 4294967040  ;;  %s512_s25 = sshll.u32 %s1009_s4, 7  ;;  %s217_s29 = scalar_lea.sflag [#allocation7], %s1009_s4 }
  0x54   : > { %s1023_s3 = scalar_lea.vmem [#allocation6], %s512_s25 }
  0x55   : > { %795 = dma.done.wait (%p1115_p8), %s217_s29, 2048  }
  0x56   : > { %797 = vsyncadd (%p1115_p8), %s217_s29, 4294965248  ;;  %v259_v0 = vld [vmem:[%s1023_s3] sm:$0xff]  ;;  %v260_v1 = vld [vmem:[%s1023_s3 + $0x8] sm:$0xff]  ;;  %s245_s21 = scalar_lea.vmem [#allocation8], %s511_s27  ;;  %s521_s19 = sshll.u32 %s816_s12, 8 }
  0x57   : > { %v261_v2 = vld [vmem:[%s1023_s3 + $0x10] sm:$0xff]  ;;  %v575_v3 = vpack.c.bf16 %v260_v1, %v259_v0  ;;  %v262_v4 = vld [vmem:[%s1023_s3 + $0x18] sm:$0xff]  ;;  %v263_v6 = vld [vmem:[%s1023_s3 + $0x20] sm:$0xff]  ;;  %s378_s15 = sshll.u32 %s245_s21, 4  ;;  %s1055_s8 = scalar_lea.hbm %s1105_s2, %s521_s19  ;;  %s1050_s15 = int_to_ptr.vmem [resolvable:$true] %s378_s15 }
  0x58   : > { %v579_v5 = vpack.c.bf16 %v262_v4, %v261_v2  ;;  %v264_v7 = vld [vmem:[%s1023_s3 + $0x28] sm:$0xff]  ;;  %v257_v9 = vld [vmem:[%s1015_s28] sm:$0xff]  ;;  %v266_v11 = vld [vmem:[%s1023_s3 + $0x38] sm:$0xff]  ;;  %s362_s16 = scalar_lea.sflag [#allocation5], %s1009_s4  ;;  %s738_s7 = scalar_lea.vmem %s1050_s15, 256 }
  0x59   : > { %576 = vmatprep.subr.bf16.mxu0 %v575_v3  ;;  %v583_v8 = vpack.c.bf16 %v264_v7, %v263_v6  ;;  %v265_v10 = vld [vmem:[%s1023_s3 + $0x30] sm:$0xff]  ;;  %572 = vmatprep.mubr.f32.mxu0 %v257_v9  ;;  %v267_v13 = vld [vmem:[%s1023_s3 + $0x40] sm:$0xff]  ;;  %v268_v14 = vld [vmem:[%s1023_s3 + $0x48] sm:$0xff]  ;;  %p739_p13 = scmp.ne.s32.totalorder %s1050_s15, %s738_s7  ;;  %p1116_p2 = scmp.ne.s32.totalorder %s1110_s22, 0 }
  0x5a   : > { %578 = vmatpush3.bf16.msra.mxu0 %v575_v3  ;;  %v587_v12 = vpack.c.bf16 %v266_v11, %v265_v10  ;;  %v591_v15 = vpack.c.bf16 %v268_v14, %v267_v13  ;;  %v269_v16 = vld [vmem:[%s1023_s3 + $0x50] sm:$0xff]  ;;  %v270_v17 = vld [vmem:[%s1023_s3 + $0x58] sm:$0xff]  ;;  %v271_v19 = vld [vmem:[%s1023_s3 + $0x60] sm:$0xff]  ;;  %s830_s12 = smov [#allocation8]  }
  0x5b   : > { %580 = vmatprep.subr.bf16.mxu0 %v579_v5  ;;  %v595_v18 = vpack.c.bf16 %v270_v17, %v269_v16  ;;  %v272_v20 = vld [vmem:[%s1023_s3 + $0x68] sm:$0xff]  ;;  %v273_v22 = vld [vmem:[%s1023_s3 + $0x70] sm:$0xff]  ;;  %v274_v23 = vld [vmem:[%s1023_s3 + $0x78] sm:$0xff]  ;;  %p740_p0 = pnand %p739_p13, %p1116_p2  ;;  %s742_s18 = sshll.u32 %s830_s12, 4  ;;  %s743_s18 = int_to_ptr.vmem [resolvable:$false] %s742_s18 }
  0x5c   : > { %v599_v21 = vpack.c.bf16 %v272_v20, %v271_v19  ;;  %v603_v24 = vpack.c.bf16 %v274_v23, %v273_v22  ;;  %v258_v25 = vld [vmem:[%s1015_s28 + $0x8] sm:$0xff]  ;;  %s744_s20 = scalar_lea.vmem %s743_s18, 512  ;;  %p745_p6 = scmp.lt.s32.totalorder %s1050_s15, %s743_s18 }
  0x5d   : > { %p741_p12 = pneg %p740_p0  ;;  %p746_p7 = scmp.lt.s32.totalorder %s744_s20, %s738_s7 }
  0x5e   : > { %582 = vmatpush3.bf16.msra.mxu0 %v579_v5 }
  0x5f   : > { %584 = vmatprep.subr.bf16.mxu0 %v583_v8  ;;  %p747_p9 = por %p746_p7, %p745_p6 }
  0x61   : > { %p748_p11 = pnand %p747_p9, %p741_p12 }
  0x62   : > { %586 = vmatpush3.bf16.msra.mxu0 %v583_v8 }
  0x63   : > { %588 = vmatprep.subr.bf16.mxu0 %v587_v12 }
  0x66   : > { %590 = vmatpush3.bf16.msra.mxu0 %v587_v12 }
  0x67   : > { %592 = vmatprep.subr.bf16.mxu0 %v591_v15 }
  0x6a   : > { %594 = vmatpush3.bf16.msra.mxu0 %v591_v15 }
  0x6b   : > { %596 = vmatprep.subr.bf16.mxu0 %v595_v18 }
  0x6e   : > { %598 = vmatpush3.bf16.msra.mxu0 %v595_v18 }
  0x6f   : > { %600 = vmatprep.subr.bf16.mxu0 %v599_v21 }
  0x72   : > { %602 = vmatpush3.bf16.msra.mxu0 %v599_v21 }
  0x73   : > { %604 = vmatprep.subr.bf16.mxu0 %v603_v24 }
  0x76   : > { %606 = vmatpush3.bf16.msra.mxu0 %v603_v24 }
  0x79   : > { %573 = vmatmul.mubr.f32.vlgmr.msra.gmra.mrb[0].mxu0 %v258_v25 }
 0x14c   : > { %v574_v26 = vpop.f32.mrb[0].mxu0 }
 0x14d   : > { %360 = vst [vmem:[%s245_s21 + $0x8] sm:$0xff] %v574_v26  ;;  %v341_v27 = vpop.f32.mrb[1].mxu0 }
 0x14e   : > { %359 = vst [vmem:[%s245_s21] sm:$0xff] %v341_v27 }
 0x14f   : > { %751 = shalt.err (!%p748_p11)
}
 0x150   : > { %s752_s6 = scalar_lea.hbm %s1055_s8, 256  ;;  %s756_s28 = scalar_lea.hbm %s1105_s2, 1024 }
 0x151   : > { %p753_p5 = scmp.ne.s32.totalorder %s1055_s8, %s752_s6  ;;  %p757_p3 = scmp.lt.u32.totalorder %s1055_s8, %s1105_s2 }
 0x152   : > { %p758_p4 = scmp.lt.u32.totalorder %s756_s28, %s752_s6  ;;  %p760_p13 = scmp.lt.u32.totalorder %s752_s6, %s1055_s8 }
 0x153   : > { %p754_p10 = pnand %p753_p5, %p1116_p2 }
 0x154   : > { %p759_p8 = por %p758_p4, %p757_p3 }
 0x155   : > { %p755_p1 = pneg %p754_p10 }
 0x156   : > { %p761_p0 = por %p760_p13, %p759_p8 }
 0x158   : > { %p762_p12 = pnand %p761_p0, %p755_p1 }
 0x15a   : > { %765 = shalt.err (!%p762_p12)
}
 0x15b   : > { %s831_s3 = smov 128   ;;  %s832_s21 = smov 8  }
 0x15c   : > { %611 = dma.vmem_to_hbm [thread:$0]  (%p1116_p2), %s1050_s15, 256, %s1055_s8, %s362_s16, %s831_s3, %s831_s3, %s832_s21  }
 0x15d PF: > { %p625_p6 = scmp.ge.s32.totalorder %s824_s14, 2  ;;  %s393_s19 = sand.u32 1, %s804_s9  }
 0x15e   : > { %p1117_p7 = scmp.ne.s32.totalorder %s1111_s24, 0  ;;  %s394_s26 = scalar_lea.sflag [#allocation5], %s393_s19 }
 0x160   : > { %p621_p9 = pnand %p625_p6, %p1117_p7 }
 0x162   : > { %799 = dma.done.wait (!%p621_p9), %s394_s26, 256  }
 0x163   : > { %801 = vsyncadd (!%p621_p9), %s394_s26, 4294967040  ;;  %s21_s14 = sadd.s32 1, %s824_s14   ;;  %s1118_s9 = smov %s808_s10 }
 0x164   : > { %p18_p11 = scmp.ge.s32.totalorder %s21_s14, 6   ;;  %s1119_s10 = smov %s812_s11 }
 0x165   : > { %s1120_s11 = smov %s904_s23  ;;  %s1121_s12 = smov %s820_s13 }
 0x166   : > { %s1122_s13 = smov %s1124_s17  ;;  %20 = sbr.rel (!%p18_p11) target bundleno = 8 (0x8), region = 94 }
 0x16d   :  { %399 = vsyncpa [#allocation4], 1 }
 0x16e   :  { %401 = vsyncpa [#allocation4 + $0x1], 1 }
 0x16f   :  { %402 = vsyncpa [#allocation7], 1 }
 0x170   :  { %404 = vsyncpa [#allocation7 + $0x1], 1 }
 0x171   :  { %405 = vsyncpa [#allocation5], 1 }
 0x172   :  { %407 = vsyncpa [#allocation5 + $0x1], 1 }

</bundles_post_ra>
